<compile_context>
chip_gen: v5e
topology: v5e:2x2
jax: 0.10.0
libtpu: 0.0.40
codegen_flags: <defaults>
</compile_context>

<pallas_src>
import functools

import jax
import jax.numpy as jnp
from jax.experimental import pallas as pl
from jax.experimental.pallas import tpu as pltpu

_LANES = 128
_MAX_TILE_ROWS = 1024  # sublane rows per K tile; roofline saturates ~512-1024


def _linear_stream_kernel(x_ref, w_ref, o_ref, *, B, N, K_sub, tk_sub,
                          need_mask):
    """One grid step: accumulate lane-wise partial sums of x[b,:] * w[n,:].

    x_ref : (B, tk_sub, 128)   lane-dense K tile of the activations
    w_ref : (N, tk_sub, 128)   lane-dense K tile of the weights (PyTorch layout)
    o_ref : (B*N, 128) f32     lane partial sums; block index constant across
                               the K grid axis, so it is VMEM-resident and
                               doubles as the accumulator.
    """
    k = pl.program_id(0)

    @pl.when(k == 0)
    def _():
        o_ref[...] = jnp.zeros_like(o_ref)

    if need_mask:
        # Ragged final K block: Pallas block padding is unspecified, so mask
        # BOTH operands to zero (NaN/Inf in stale VMEM must not leak in).
        valid = K_sub - k * tk_sub
        rows = jax.lax.broadcasted_iota(jnp.int32, (tk_sub, _LANES), 0)
        mask = rows < valid
    else:
        mask = None

    parts = []
    for b in range(B):
        xb = x_ref[b].astype(jnp.float32)
        if mask is not None:
            xb = jnp.where(mask, xb, 0.0)
        for n in range(N):
            # Upcast/mask inline per (b, n) product so only a couple of
            # (tk_sub, 128) f32 temporaries are live at a time.
            wn = w_ref[n].astype(jnp.float32)
            if mask is not None:
                wn = jnp.where(mask, wn, 0.0)
            parts.append(jnp.sum(xb * wn, axis=0, keepdims=True))  # (1, 128)
    o_ref[...] += jnp.concatenate(parts, axis=0)                   # (B*N, 128)


def _pick_tile(K_sub, max_rows=_MAX_TILE_ROWS):
    """Pick tk_sub (sublane rows per K tile) and whether masking is needed."""
    if K_sub <= max_rows:
        return K_sub, False          # single full-extent block, no mask
    cap = max(8, (max_rows // 8) * 8)
    # Prefer a multiple-of-8 divisor of K_sub so no in-kernel masking is
    # needed; only accept divisors >= cap//2 so the grid doesn't blow up.
    t = cap
    lo = max(8, cap // 2)
    while t >= lo:
        if K_sub % t == 0:
            return t, False
        t -= 8
    return cap, True                 # fallback: masked ragged final block


def linear_pallas(x_flat, w, bias=None):
    """out[B, N] = x_flat[B, K] @ w[N, K].T + bias[N] (streaming VPU kernel)."""
    B, K = x_flat.shape
    N, Kw = w.shape
    assert K == Kw, (K, Kw)

    K_main = (K // _LANES) * _LANES
    tail = K - K_main

    logits = jnp.zeros((B, N), jnp.float32)

    if K_main > 0:
        # NOTE: for the real layer (K = 1228800) and the demo shapes K is a
        # multiple of 128, so these are metadata-only views (no HBM copy).
        x_main = x_flat if tail == 0 else x_flat[:, :K_main]
        w_main = w if tail == 0 else w[:, :K_main]
        K_sub = K_main // _LANES
        x3 = x_main.reshape(B, K_sub, _LANES)
        w3 = w_main.reshape(N, K_sub, _LANES)

        tk_sub, need_mask = _pick_tile(K_sub)
        S = -(-K_sub // tk_sub)

        kernel = functools.partial(
            _linear_stream_kernel,
            B=B, N=N, K_sub=K_sub, tk_sub=tk_sub, need_mask=need_mask)

        bytes_accessed = int(
            B * K_main * jnp.dtype(x3.dtype).itemsize
            + N * K_main * jnp.dtype(w3.dtype).itemsize
            + B * N * _LANES * 4)

        partials = pl.pallas_call(
            kernel,
            out_shape=jax.ShapeDtypeStruct((B * N, _LANES), jnp.float32),
            grid_spec=pltpu.PrefetchScalarGridSpec(
                num_scalar_prefetch=0,
                grid=(S,),
                in_specs=[
                    pl.BlockSpec((B, tk_sub, _LANES), lambda k: (0, k, 0)),
                    pl.BlockSpec((N, tk_sub, _LANES), lambda k: (0, k, 0)),
                ],
                out_specs=pl.BlockSpec((B * N, _LANES), lambda k: (0, 0)),
            ),
            compiler_params=pltpu.CompilerParams(
                dimension_semantics=("arbitrary",),
                vmem_limit_bytes=32 * 1024 * 1024,
            ),
            cost_estimate=pl.CostEstimate(
                flops=2 * B * N * K_main,
                transcendentals=0,
                bytes_accessed=bytes_accessed),
        )(x3, w3)

        # Tiny XLA epilogue: 128-lane reduce.
        logits = partials.sum(axis=1).reshape(B, N)

    if tail:
        # <128-lane K tail: one tiny dot in XLA instead of padding full HBM
        # copies of x and w.
        x_t = x_flat[:, K_main:].astype(jnp.float32)
        w_t = w[:, K_main:].astype(jnp.float32)
        logits = logits + x_t @ w_t.T

    if bias is not None:
        logits = logits + bias.astype(jnp.float32).reshape(1, N)
    return logits


class SegmentationModuleJAX:
    """JAX/Pallas port of SegmentationModule (scale == 1 forward path)."""

    def __init__(self, in_features, classes=4, out_features=4, seed=0,
                 param_dtype=jnp.bfloat16):
        # Reference hard-codes nn.Linear(in_features, 4); weights are stored in
        # bf16 (PyTorch (out, in) layout = lane-dense orientation for the
        # streaming kernel); accumulation stays f32 inside the kernel.
        self.classes = classes
        self.out_features = out_features
        key = jax.random.PRNGKey(seed)
        kw, kb = jax.random.split(key)
        bound = 1.0 / (float(in_features) ** 0.5)
        self.w = jax.random.uniform(
            kw, (out_features, in_features), jnp.float32,
            minval=-bound, maxval=bound).astype(param_dtype)
        self.bias = jax.random.uniform(
            kb, (out_features,), jnp.float32,
            minval=-bound, maxval=bound).astype(jnp.float32)

    # TODO(synk): `body` and `head` are externally supplied nn.Modules with no
    # architecture in the reference file; modeled as identity.
    def _body(self, x):
        return x

    def _head(self, x):
        return x

    def forward(self, x, scales=None, do_flip=True):
        # forward() always calls _network(x, 1): scale == 1 -> no upsample.
        x_up = self._body(x)
        x_up = self._head(x_up)
        B = x_up.shape[0]
        x_flat = x_up.reshape(B, -1)     # flatten NCHW features (metadata only)
        sem_logits = linear_pallas(x_flat, self.w, self.bias)
        return sem_logits


if __name__ == "__main__":
    # Small shapes consistent with the module's forward: NCHW input.
    B, C, H, W = 2, 4, 16, 16
    key = jax.random.PRNGKey(0)
    x = jax.random.normal(key, (B, C, H, W), dtype=jnp.float32)

    module = SegmentationModuleJAX(in_features=C * H * W, classes=4, seed=0)
    out = module.forward(x, scales=[1], do_flip=False)
    out = jax.block_until_ready(out)

    # Sanity check against a plain-JAX reference (same bf16 weights).
    ref = (x.reshape(B, -1) @ module.w.astype(jnp.float32).T
           + module.bias.astype(jnp.float32))
    assert out.shape == (B, 4), out.shape
    assert jnp.allclose(out, ref, atol=1e-3, rtol=1e-3), \
        float(jnp.max(jnp.abs(out - ref)))
    print("KERNEL_OK")
</pallas_src>

<mosaic_0001>
module attributes {stable_mosaic.version = 11 : i64} {
  func.func @_linear_stream_kernel(%arg0: i32, %arg1: memref<2x8x128xf32, #tpu.memory_space<vmem>>, %arg2: memref<4x8x128xbf16, #tpu.memory_space<vmem>>, %arg3: memref<8x128xf32, #tpu.memory_space<vmem>>) attributes {dimension_semantics = [#tpu.dimension_semantics<arbitrary>], iteration_bounds = array<i64: 1>, scalar_prefetch = 0 : i64, scratch_operands = 0 : i64, tpu.core_type = #tpu.core_type<tc>, window_params = [{transform_indices = @transform_0, window_bounds = array<i64: 2, 8, 128>}, {transform_indices = @transform_1, window_bounds = array<i64: 4, 8, 128>}, {pipeline_mode = #tpu.pipeline_mode<synchronous>, transform_indices = @transform_2, window_bounds = array<i64: 8, 128>}]} {
    %c0_i32 = arith.constant 0 : i32
    %0 = arith.cmpi eq, %arg0, %c0_i32 : i32
    %1 = arith.extui %0 : i1 to i32
    %c0_i32_0 = arith.constant 0 : i32
    %2 = arith.cmpi ne, %1, %c0_i32_0 : i32
    scf.if %2 {
      %cst_38 = arith.constant 0.000000e+00 : f32
      %59 = vector.broadcast %cst_38 : f32 to vector<8x128xf32>
      %c0_39 = arith.constant 0 : index
      %c0_40 = arith.constant 0 : index
      %60 = vector.load %arg3[%c0_39, %c0_40] : memref<8x128xf32, #tpu.memory_space<vmem>>, vector<8x128xf32>
      tpu.vector_store %arg3[%c0_39, %c0_40], %59 {strides = array<i32>} : memref<8x128xf32, #tpu.memory_space<vmem>>, vector<8x128xf32>,
    } else {
    }
    %c0 = arith.constant 0 : index
    %c0_1 = arith.constant 0 : index
    %c0_2 = arith.constant 0 : index
    %3 = vector.load %arg1[%c0, %c0_1, %c0_2] : memref<2x8x128xf32, #tpu.memory_space<vmem>>, vector<1x8x128xf32>
    %4 = vector.shape_cast %3 : vector<1x8x128xf32> to vector<8x128xf32>
    %c0_3 = arith.constant 0 : index
    %c0_4 = arith.constant 0 : index
    %c0_5 = arith.constant 0 : index
    %5 = vector.load %arg2[%c0_3, %c0_4, %c0_5] : memref<4x8x128xbf16, #tpu.memory_space<vmem>>, vector<1x8x128xbf16>
    %6 = vector.shape_cast %5 : vector<1x8x128xbf16> to vector<8x128xbf16>
    %7 = arith.extf %6 : vector<8x128xbf16> to vector<8x128xf32>
    %8 = arith.mulf %4, %7 : vector<8x128xf32>
    %cst = arith.constant dense<0.000000e+00> : vector<128xf32>
    %9 = vector.multi_reduction <add>, %8, %cst [0] : vector<8x128xf32> to vector<128xf32>
    %10 = vector.shape_cast %9 : vector<128xf32> to vector<1x128xf32>
    %c1 = arith.constant 1 : index
    %c0_6 = arith.constant 0 : index
    %c0_7 = arith.constant 0 : index
    %11 = vector.load %arg2[%c1, %c0_6, %c0_7] : memref<4x8x128xbf16, #tpu.memory_space<vmem>>, vector<1x8x128xbf16>
    %12 = vector.shape_cast %11 : vector<1x8x128xbf16> to vector<8x128xbf16>
    %13 = arith.extf %12 : vector<8x128xbf16> to vector<8x128xf32>
    %14 = arith.mulf %4, %13 : vector<8x128xf32>
    %cst_8 = arith.constant dense<0.000000e+00> : vector<128xf32>
    %15 = vector.multi_reduction <add>, %14, %cst_8 [0] : vector<8x128xf32> to vector<128xf32>
    %16 = vector.shape_cast %15 : vector<128xf32> to vector<1x128xf32>
    %c2 = arith.constant 2 : index
    %c0_9 = arith.constant 0 : index
    %c0_10 = arith.constant 0 : index
    %17 = vector.load %arg2[%c2, %c0_9, %c0_10] : memref<4x8x128xbf16, #tpu.memory_space<vmem>>, vector<1x8x128xbf16>
    %18 = vector.shape_cast %17 : vector<1x8x128xbf16> to vector<8x128xbf16>
    %19 = arith.extf %18 : vector<8x128xbf16> to vector<8x128xf32>
    %20 = arith.mulf %4, %19 : vector<8x128xf32>
    %cst_11 = arith.constant dense<0.000000e+00> : vector<128xf32>
    %21 = vector.multi_reduction <add>, %20, %cst_11 [0] : vector<8x128xf32> to vector<128xf32>
    %22 = vector.shape_cast %21 : vector<128xf32> to vector<1x128xf32>
    %c3 = arith.constant 3 : index
    %c0_12 = arith.constant 0 : index
    %c0_13 = arith.constant 0 : index
    %23 = vector.load %arg2[%c3, %c0_12, %c0_13] : memref<4x8x128xbf16, #tpu.memory_space<vmem>>, vector<1x8x128xbf16>
    %24 = vector.shape_cast %23 : vector<1x8x128xbf16> to vector<8x128xbf16>
    %25 = arith.extf %24 : vector<8x128xbf16> to vector<8x128xf32>
    %26 = arith.mulf %4, %25 : vector<8x128xf32>
    %cst_14 = arith.constant dense<0.000000e+00> : vector<128xf32>
    %27 = vector.multi_reduction <add>, %26, %cst_14 [0] : vector<8x128xf32> to vector<128xf32>
    %28 = vector.shape_cast %27 : vector<128xf32> to vector<1x128xf32>
    %c1_15 = arith.constant 1 : index
    %c0_16 = arith.constant 0 : index
    %c0_17 = arith.constant 0 : index
    %29 = vector.load %arg1[%c1_15, %c0_16, %c0_17] : memref<2x8x128xf32, #tpu.memory_space<vmem>>, vector<1x8x128xf32>
    %30 = vector.shape_cast %29 : vector<1x8x128xf32> to vector<8x128xf32>
    %c0_18 = arith.constant 0 : index
    %c0_19 = arith.constant 0 : index
    %c0_20 = arith.constant 0 : index
    %31 = vector.load %arg2[%c0_18, %c0_19, %c0_20] : memref<4x8x128xbf16, #tpu.memory_space<vmem>>, vector<1x8x128xbf16>
    %32 = vector.shape_cast %31 : vector<1x8x128xbf16> to vector<8x128xbf16>
    %33 = arith.extf %32 : vector<8x128xbf16> to vector<8x128xf32>
    %34 = arith.mulf %30, %33 : vector<8x128xf32>
    %cst_21 = arith.constant dense<0.000000e+00> : vector<128xf32>
    %35 = vector.multi_reduction <add>, %34, %cst_21 [0] : vector<8x128xf32> to vector<128xf32>
    %36 = vector.shape_cast %35 : vector<128xf32> to vector<1x128xf32>
    %c1_22 = arith.constant 1 : index
    %c0_23 = arith.constant 0 : index
    %c0_24 = arith.constant 0 : index
    %37 = vector.load %arg2[%c1_22, %c0_23, %c0_24] : memref<4x8x128xbf16, #tpu.memory_space<vmem>>, vector<1x8x128xbf16>
    %38 = vector.shape_cast %37 : vector<1x8x128xbf16> to vector<8x128xbf16>
    %39 = arith.extf %38 : vector<8x128xbf16> to vector<8x128xf32>
    %40 = arith.mulf %30, %39 : vector<8x128xf32>
    %cst_25 = arith.constant dense<0.000000e+00> : vector<128xf32>
    %41 = vector.multi_reduction <add>, %40, %cst_25 [0] : vector<8x128xf32> to vector<128xf32>
    %42 = vector.shape_cast %41 : vector<128xf32> to vector<1x128xf32>
    %c2_26 = arith.constant 2 : index
    %c0_27 = arith.constant 0 : index
    %c0_28 = arith.constant 0 : index
    %43 = vector.load %arg2[%c2_26, %c0_27, %c0_28] : memref<4x8x128xbf16, #tpu.memory_space<vmem>>, vector<1x8x128xbf16>
    %44 = vector.shape_cast %43 : vector<1x8x128xbf16> to vector<8x128xbf16>
    %45 = arith.extf %44 : vector<8x128xbf16> to vector<8x128xf32>
    %46 = arith.mulf %30, %45 : vector<8x128xf32>
    %cst_29 = arith.constant dense<0.000000e+00> : vector<128xf32>
    %47 = vector.multi_reduction <add>, %46, %cst_29 [0] : vector<8x128xf32> to vector<128xf32>
    %48 = vector.shape_cast %47 : vector<128xf32> to vector<1x128xf32>
    %c3_30 = arith.constant 3 : index
    %c0_31 = arith.constant 0 : index
    %c0_32 = arith.constant 0 : index
    %49 = vector.load %arg2[%c3_30, %c0_31, %c0_32] : memref<4x8x128xbf16, #tpu.memory_space<vmem>>, vector<1x8x128xbf16>
    %50 = vector.shape_cast %49 : vector<1x8x128xbf16> to vector<8x128xbf16>
    %51 = arith.extf %50 : vector<8x128xbf16> to vector<8x128xf32>
    %52 = arith.mulf %30, %51 : vector<8x128xf32>
    %cst_33 = arith.constant dense<0.000000e+00> : vector<128xf32>
    %53 = vector.multi_reduction <add>, %52, %cst_33 [0] : vector<8x128xf32> to vector<128xf32>
    %54 = vector.shape_cast %53 : vector<128xf32> to vector<1x128xf32>
    %c0_34 = arith.constant 0 : index
    %c0_35 = arith.constant 0 : index
    %55 = vector.load %arg3[%c0_34, %c0_35] : memref<8x128xf32, #tpu.memory_space<vmem>>, vector<8x128xf32>
    %56 = tpu.concatenate %10, %16, %22, %28, %36, %42, %48, %54 in 0 : vector<1x128xf32>, vector<1x128xf32>, vector<1x128xf32>, vector<1x128xf32>, vector<1x128xf32>, vector<1x128xf32>, vector<1x128xf32>, vector<1x128xf32> -> vector<8x128xf32>
    %57 = arith.addf %55, %56 : vector<8x128xf32>
    %c0_36 = arith.constant 0 : index
    %c0_37 = arith.constant 0 : index
    %58 = vector.load %arg3[%c0_36, %c0_37] : memref<8x128xf32, #tpu.memory_space<vmem>>, vector<8x128xf32>
    tpu.vector_store %arg3[%c0_36, %c0_37], %57 {strides = array<i32>} : memref<8x128xf32, #tpu.memory_space<vmem>>, vector<8x128xf32>,
    return
  }
  func.func @transform_0(%arg0: i32) -> (i32, i32, i32) {
    %c0_i32 = arith.constant 0 : i32
    %c0_i32_0 = arith.constant 0 : i32
    %c0_i32_1 = arith.constant 0 : i32
    return %c0_i32, %arg0, %c0_i32_0 : i32, i32, i32
  }
  func.func @transform_1(%arg0: i32) -> (i32, i32, i32) {
    %c0_i32 = arith.constant 0 : i32
    %c0_i32_0 = arith.constant 0 : i32
    %c0_i32_1 = arith.constant 0 : i32
    return %c0_i32, %arg0, %c0_i32_0 : i32, i32, i32
  }
  func.func @transform_2(%arg0: i32) -> (i32, i32) {
    %c0_i32 = arith.constant 0 : i32
    %c0_i32_0 = arith.constant 0 : i32
    %c0_i32_1 = arith.constant 0 : i32
    return %c0_i32, %c0_i32_0 : i32, i32
  }
}

</mosaic_0001>

<bundles_post_ra>
// kernel: tpu_custom_call.1
= control target key start
LH: loop header
LB: loop body
LE: loop exit
PB: predicated region body
PF: predicated region fallthrough
CT: control target
= control target key end

     0   :  { %7 = vsyncpa [#allocation3], 0  ;;  %s273_s0 = inlined_call_operand.hbm [shape: f32[2,8,128], index: 0, kind: input, shape index: {}]   ;;  %s274_s1 = inlined_call_operand.hbm [shape: bf16[4,8,128], index: 1, kind: input, shape index: {}]   ;;  %s275_s2 = inlined_call_operand.hbm [shape: f32[8,128], index: 2, kind: output, shape index: {}]  }
   0x1   :  { %8 = vsyncpa [#allocation6], 0 }
   0x2   :  { %9 = vsyncpa [#allocation4], 0  ;;  %s14_s11 = sshll.u32 %s273_s0, 4  ;;  %s240_s12 = smov [#allocation2]   ;;  %s15_s11 = int_to_ptr.hbm [resolvable:$true] %s14_s11 }
   0x3   :  { %s16_s13 = sshll.u32 %s240_s12, 4  ;;  %s27_s16 = sshll.u32 %s274_s1, 4  ;;  %s17_s13 = int_to_ptr.vmem [resolvable:$true] %s16_s13  ;;  %s28_s16 = int_to_ptr.hbm [resolvable:$true] %s27_s16 }
   0x4   :  { %s241_s17 = smov 128   ;;  %s242_s18 = smov 8  }
   0x5   :  { %22 = dma.hbm_to_vmem [thread:$0]  %s15_s11, 256, %s17_s13, [#allocation3], %s241_s17, %s241_s17, %s242_s18  }
   0x6   :  { %s243_s19 = smov [#allocation5]   ;;  %s244_s21 = smov 64  }
   0x7   :  { %s29_s20 = sshll.u32 %s243_s19, 4  ;;  %s245_s22 = smov 4   ;;  %s30_s20 = int_to_ptr.vmem [resolvable:$true] %s29_s20 }
   0x8   :  { %35 = dma.hbm_to_vmem [thread:$0]  %s28_s16, 256, %s30_s20, [#allocation6], %s244_s21, %s244_s21, %s245_s22  }
   0x9   :  { %234 = dma.done.wait [#allocation3], 256  }
   0xa   :  { %235 = vsyncadd [#allocation3], 4294967040 }
   0xb   :  { %236 = dma.done.wait [#allocation6], 256  }
   0xc   :  { %237 = vsyncadd [#allocation6], 4294967040  ;;  %v49_v0 = vld [vmem:[#allocation2] sm:$0xff]  ;;  %v50_v1 = vld [vmem:[#allocation5] sm:$0xff]   ;;  %vm120_vm0 = vcmask 1040384   ;;  %vm122_vm1 = vcmask 1041408  }
   0xd   :  { %v70_v2 = vld [vmem:[#allocation5 + $0x8] sm:$0xff]   ;;  %v51_v3 = vunpack.c.l.bf16 %v50_v1  ;;  %v61_v4 = vunpack.c.h.bf16 %v50_v1  ;;  %v90_v7 = vld [vmem:[#allocation2 + $0x8] sm:$0xff]  ;;  %vm124_vm2 = vcmask 1042432   ;;  %vm126_vm3 = vcmask 1043456   ;;  %s246_s0 = smov [#allocation7]   ;;  %s143_s25 = sshll.u32 %s275_s2, 4  ;;  %s144_s25 = int_to_ptr.hbm [resolvable:$true] %s143_s25 }
   0xe   :  { %v71_v5 = vunpack.c.l.bf16 %v70_v2  ;;  %v81_v6 = vunpack.c.h.bf16 %v70_v2  ;;  %vm128_vm4 = vcmask 1044480   ;;  %vm130_vm5 = vcmask 1045504   ;;  %s141_s1 = sshll.u32 %s246_s0, 4  ;;  %s142_s1 = int_to_ptr.vmem [resolvable:$true] %s141_s1 }
   0xf   :  { %v52_v8 = vmul.f32 %v51_v3, %v49_v0  ;;  %v62_v9 = vmul.f32 %v61_v4, %v49_v0  ;;  %v91_v12 = vmul.f32 %v90_v7, %v51_v3  ;;  %v98_v13 = vmul.f32 %v90_v7, %v61_v4 }
  0x10   :  { %v72_v10 = vmul.f32 %v71_v5, %v49_v0  ;;  %v82_v11 = vmul.f32 %v81_v6, %v49_v0  ;;  %v105_v14 = vmul.f32 %v90_v7, %v71_v5  ;;  %v112_v15 = vmul.f32 %v90_v7, %v81_v6 }
  0x11   :  { %v53_v16 = vrot.slane %v52_v8, 4  ;;  %v63_v17 = vrot.slane %v62_v9, 4  ;;  %v92_v20 = vrot.slane %v91_v12, 4  ;;  %v99_v21 = vrot.slane %v98_v13, 4 }
  0x12   :  { %v73_v18 = vrot.slane %v72_v10, 4  ;;  %v83_v19 = vrot.slane %v82_v11, 4  ;;  %v106_v22 = vrot.slane %v105_v14, 4  ;;  %v113_v23 = vrot.slane %v112_v15, 4 }
  0x13   :  { %v54_v24 = vadd.f32 %v53_v16, %v52_v8  ;;  %v64_v25 = vadd.f32 %v63_v17, %v62_v9  ;;  %v93_v28 = vadd.f32 %v92_v20, %v91_v12  ;;  %v100_v29 = vadd.f32 %v99_v21, %v98_v13 }
  0x14   :  { %v74_v26 = vadd.f32 %v73_v18, %v72_v10  ;;  %v84_v27 = vadd.f32 %v83_v19, %v82_v11  ;;  %v107_v30 = vadd.f32 %v106_v22, %v105_v14  ;;  %v114_v31 = vadd.f32 %v113_v23, %v112_v15 }
  0x15   :  { %v55_v32 = vrot.slane %v54_v24, 2  ;;  %v65_v33 = vrot.slane %v64_v25, 2  ;;  %v94_v36 = vrot.slane %v93_v28, 2  ;;  %v101_v37 = vrot.slane %v100_v29, 2 }
  0x16   :  { %v75_v34 = vrot.slane %v74_v26, 2  ;;  %v85_v35 = vrot.slane %v84_v27, 2  ;;  %v108_v38 = vrot.slane %v107_v30, 2  ;;  %v115_v39 = vrot.slane %v114_v31, 2 }
  0x17   :  { %v56_v40 = vadd.f32 %v55_v32, %v54_v24  ;;  %v66_v41 = vadd.f32 %v65_v33, %v64_v25  ;;  %v95_v44 = vadd.f32 %v94_v36, %v93_v28  ;;  %v102_v45 = vadd.f32 %v101_v37, %v100_v29 }
  0x18   :  { %v76_v42 = vadd.f32 %v75_v34, %v74_v26  ;;  %v86_v43 = vadd.f32 %v85_v35, %v84_v27  ;;  %v109_v46 = vadd.f32 %v108_v38, %v107_v30  ;;  %v116_v47 = vadd.f32 %v115_v39, %v114_v31 }
  0x19   :  { %v57_v48 = vrot.slane %v56_v40, 1  ;;  %v67_v49 = vrot.slane %v66_v41, 1  ;;  %v96_v52 = vrot.slane %v95_v44, 1  ;;  %v103_v53 = vrot.slane %v102_v45, 1 }
  0x1a   :  { %v77_v50 = vrot.slane %v76_v42, 1  ;;  %v87_v51 = vrot.slane %v86_v43, 1  ;;  %v110_v54 = vrot.slane %v109_v46, 1  ;;  %v117_v55 = vrot.slane %v116_v47, 1 }
  0x1b   :  { %v58_v56 = vadd.f32 %v57_v48, %v56_v40  ;;  %v68_v57 = vadd.f32 %v67_v49, %v66_v41  ;;  %v97_v60 = vadd.f32 %v96_v52, %v95_v44  ;;  %v104_v61 = vadd.f32 %v103_v53, %v102_v45 }
  0x1c   :  { %v78_v58 = vadd.f32 %v77_v50, %v76_v42  ;;  %v88_v59 = vadd.f32 %v87_v51, %v86_v43  ;;  %v111_v63 = vadd.f32 %v110_v54, %v109_v46  ;;  %v118_v1 = vadd.f32 %v117_v55, %v116_v47 }
  0x1d   :  { %v121_v62 = vsel %vm120_vm0, %v58_v56, %v68_v57  ;;  %vm132_vm6 = vcmask 1046528  }
  0x1e   :  { %v123_v0 = vsel %vm122_vm1, %v121_v62, %v78_v58 }
  0x1f   :  { %v125_v2 = vsel %vm124_vm2, %v123_v0, %v88_v59 }
  0x20   :  { %v127_v3 = vsel %vm126_vm3, %v125_v2, %v97_v60 }
  0x21   :  { %v129_v4 = vsel %vm128_vm4, %v127_v3, %v104_v61 }
  0x22   :  { %v131_v5 = vsel %vm130_vm5, %v129_v4, %v111_v63 }
  0x23   :  { %v133_v6 = vsel %vm132_vm6, %v131_v5, %v118_v1 }
  0x24   :  { %135 = vst [vmem:[#allocation7] sm:$0xff] %v133_v6 }
  0x25   :  { %146 = dma.vmem_to_hbm [thread:$0]  %s142_s1, 128, %s144_s25, [#allocation4]  }
  0x26   :  { %238 = dma.done.wait [#allocation4], 128  }
  0x27   :  { %239 = vsyncadd [#allocation4], 4294967168 }
  0x28   :  { %151 = vsyncpa [#allocation3], 1 }
  0x29   :  { %152 = vsyncpa [#allocation6], 1 }
  0x2a   :  { %153 = vsyncpa [#allocation4], 1 }

</bundles_post_ra>
